<compile_context>
chip_gen: v7x
topology: tpu7x:2x2x1
jax: 0.10.0
libtpu: 0.0.40
codegen_flags: <defaults>
</compile_context>

<pallas_src>
import functools

import jax
import jax.numpy as jnp
from jax.experimental import pallas as pl
from jax.experimental.pallas import tpu as pltpu


def _gmof_kernel(x_ref, o_ref, *, rho_sq, approx):
    x = x_ref[...].astype(jnp.float32)
    sq = x * x
    # out = rho^2 * sq / (sq + rho^2)
    out = (rho_sq * sq) * pl.reciprocal(sq + rho_sq, approx=approx)
    o_ref[...] = out.astype(o_ref.dtype)


def _round_up(v: int, m: int) -> int:
    return ((v + m - 1) // m) * m


def _use_approx_reciprocal() -> bool:
    # EUP (approx) reciprocal only on v7x, where ~3.2 TB/s HBM narrows the
    # VALU slack; exact reciprocal elsewhere (fully hidden under DMA).
    try:
        kind = jax.devices()[0].device_kind.lower()
    except Exception:
        return False
    return "v7" in kind


def _pick_row_tile(rows, lanes, ebytes, target_block_bytes, min_grid_steps, align):
    """Row tile: ~target_block_bytes, aligned, >= min_grid_steps grid steps,
    preferring an exact divisor of rows (no ragged/masked tail block)."""
    target_rows = max(align, (target_block_bytes // (lanes * ebytes)) // align * align)
    cap = max(align, _round_up(-(-rows // min_grid_steps), align))
    row_tile = max(align, min(target_rows, cap))
    # Prefer the largest aligned divisor of rows within [row_tile/2, row_tile].
    lo = max(align, row_tile // 2)
    for cand in range(row_tile, lo - 1, -align):
        if rows % cand == 0:
            return cand
    return row_tile


def gmof(
    residual: jax.Array,
    rho: float = 1.0,
    *,
    min_pallas_elems: int = 1 << 20,
    target_block_bytes: int = 4 << 20,
    min_grid_steps: int = 4,
    alias_input: bool = False,
) -> jax.Array:
    """GMoF robust error. Elementwise; works for any-rank input."""
    rho_sq = float(rho) ** 2

    # Match torch semantics for integer inputs (torch.div promotes to float).
    out_dtype = (
        residual.dtype
        if jnp.issubdtype(residual.dtype, jnp.floating)
        else jnp.float32
    )
    x = residual.astype(out_dtype)
    total = x.size

    def _jnp_path(v):
        sq = v.astype(jnp.float32) ** 2
        return (rho_sq * sq / (sq + rho_sq)).astype(out_dtype)

    # Tiny inputs: pallas_call launch/pipeline overhead dwarfs the data; XLA's
    # fused elementwise path is already at roofline there.
    if total == 0 or total < min_pallas_elems:
        return _jnp_path(x)

    ebytes = jnp.dtype(out_dtype).itemsize
    # Sub-32-bit dtypes pack rows along sublanes; keep tiles a multiple of the
    # native packed tile (8 rows f32, 16 bf16/f16, 32 for 8-bit).
    align = 8 * max(1, 4 // ebytes)

    # Pick a lane-dense width L that divides the flattened size.
    lanes = None
    for cand in (512, 1024, 256, 128):
        if total % cand == 0 and total // cand >= align:
            lanes = cand
            break
    if lanes is None:
        # Awkward size (not a multiple of 128): avoid pad/slice HBM passes
        # entirely and let XLA handle it.
        return _jnp_path(x)

    rows = total // lanes
    x2d = x.reshape(rows, lanes)

    row_tile = _pick_row_tile(
        rows, lanes, ebytes, target_block_bytes, min_grid_steps, align
    )
    grid = (pl.cdiv(rows, row_tile),)

    block_bytes = row_tile * lanes * ebytes
    # Double-buffered in + out plus headroom; explicit so the same code neither
    # silently shrinks buffering on v5e nor trips scoped-VMEM limits elsewhere.
    vmem_limit = int(max(4 * block_bytes + (2 << 20), 16 << 20))

    kernel = functools.partial(
        _gmof_kernel, rho_sq=rho_sq, approx=_use_approx_reciprocal()
    )

    call_kwargs = {}
    if alias_input:
        # Only safe when the caller donates `residual` and does not reuse it.
        call_kwargs["input_output_aliases"] = {0: 0}

    out2d = pl.pallas_call(
        kernel,
        out_shape=jax.ShapeDtypeStruct((rows, lanes), out_dtype),
        grid_spec=pltpu.PrefetchScalarGridSpec(
            num_scalar_prefetch=0,
            grid=grid,
            in_specs=[pl.BlockSpec((row_tile, lanes), lambda i: (i, 0))],
            out_specs=pl.BlockSpec((row_tile, lanes), lambda i: (i, 0)),
        ),
        compiler_params=pltpu.CompilerParams(
            dimension_semantics=("parallel",),
            vmem_limit_bytes=vmem_limit,
        ),
        cost_estimate=pl.CostEstimate(
            flops=4 * total,
            transcendentals=total,
            bytes_accessed=2 * total * ebytes,
        ),
        **call_kwargs,
    )(x2d)

    return out2d.reshape(residual.shape)


def gmof_ref(residual: jax.Array, rho: float = 1.0) -> jax.Array:
    out_dtype = (
        residual.dtype
        if jnp.issubdtype(residual.dtype, jnp.floating)
        else jnp.float32
    )
    sq = residual.astype(jnp.float32) ** 2
    return ((rho ** 2) * (sq / (sq + rho ** 2))).astype(out_dtype)


if __name__ == "__main__":
    key = jax.random.PRNGKey(0)
    k1, k2, k3 = jax.random.split(key, 3)

    approx = _use_approx_reciprocal()
    f32_rtol, f32_atol = (1e-3, 1e-3) if approx else (1e-5, 1e-6)

    # 1) Module-typical small NCHW residual: handled by the jnp fast path
    #    (kernel launch overhead would dominate at 8 KiB).
    x_small = jax.random.normal(k1, (2, 4, 16, 16), dtype=jnp.float32)
    out_small = jax.block_until_ready(gmof(x_small, rho=1.0))
    assert out_small.shape == x_small.shape and out_small.dtype == x_small.dtype
    assert jnp.allclose(out_small, gmof_ref(x_small, 1.0), rtol=1e-5, atol=1e-6)

    # 2) Force the Pallas path on a modest f32 tensor: lane-dense (128, 512)
    #    view, row_tile=32 divides rows exactly, grid of 4 parallel steps.
    x_f32 = jax.random.normal(k2, (4, 4, 64, 64), dtype=jnp.float32)
    out_f32 = jax.block_until_ready(gmof(x_f32, rho=2.0, min_pallas_elems=1))
    assert out_f32.shape == x_f32.shape and out_f32.dtype == x_f32.dtype
    assert jnp.allclose(out_f32, gmof_ref(x_f32, 2.0), rtol=f32_rtol, atol=f32_atol)

    # 3) bf16 input through the Pallas path: 16-row-aligned tiles (packed
    #    (16,128) native tile), f32 math inside the kernel.
    x_bf16 = jax.random.normal(k3, (2, 8, 64, 64), dtype=jnp.bfloat16)
    out_bf16 = jax.block_until_ready(gmof(x_bf16, rho=1.0, min_pallas_elems=1))
    assert out_bf16.shape == x_bf16.shape and out_bf16.dtype == x_bf16.dtype
    assert jnp.allclose(
        out_bf16.astype(jnp.float32),
        gmof_ref(x_bf16, 1.0).astype(jnp.float32),
        rtol=2e-2,
        atol=2e-2,
    )

    print("KERNEL_OK")
</pallas_src>

<mosaic_0001>
module attributes {stable_mosaic.version = 11 : i64} {
  func.func @_gmof_kernel(%arg0: i32, %arg1: memref<32x512xf32, #tpu.memory_space<vmem>>, %arg2: memref<32x512xf32, #tpu.memory_space<vmem>>) attributes {dimension_semantics = [#tpu.dimension_semantics<parallel>], iteration_bounds = array<i64: 4>, scalar_prefetch = 0 : i64, scratch_operands = 0 : i64, tpu.core_type = #tpu.core_type<tc>, window_params = [{transform_indices = @transform_0, window_bounds = array<i64: 32, 512>}, {transform_indices = @transform_1, window_bounds = array<i64: 32, 512>}]} {
    %c0 = arith.constant 0 : index
    %c0_0 = arith.constant 0 : index
    %0 = vector.load %arg1[%c0, %c0_0] : memref<32x512xf32, #tpu.memory_space<vmem>>, vector<32x512xf32>
    %1 = arith.mulf %0, %0 : vector<32x512xf32>
    %cst = arith.constant 4.000000e+00 : f32
    %2 = vector.broadcast %cst : f32 to vector<32x512xf32>
    %3 = arith.mulf %2, %1 : vector<32x512xf32>
    %cst_1 = arith.constant 4.000000e+00 : f32
    %4 = vector.broadcast %cst_1 : f32 to vector<32x512xf32>
    %5 = arith.addf %1, %4 : vector<32x512xf32>
    %6 = tpu.reciprocal %5 : vector<32x512xf32> -> vector<32x512xf32>
    %7 = arith.mulf %3, %6 : vector<32x512xf32>
    %c0_2 = arith.constant 0 : index
    %c0_3 = arith.constant 0 : index
    %8 = vector.load %arg2[%c0_2, %c0_3] : memref<32x512xf32, #tpu.memory_space<vmem>>, vector<32x512xf32>
    tpu.vector_store %arg2[%c0_2, %c0_3], %7 {strides = array<i32>} : memref<32x512xf32, #tpu.memory_space<vmem>>, vector<32x512xf32>,
    return
  }
  func.func @transform_0(%arg0: i32) -> (i32, i32) {
    %c0_i32 = arith.constant 0 : i32
    %c0_i32_0 = arith.constant 0 : i32
    return %arg0, %c0_i32 : i32, i32
  }
  func.func @transform_1(%arg0: i32) -> (i32, i32) {
    %c0_i32 = arith.constant 0 : i32
    %c0_i32_0 = arith.constant 0 : i32
    return %arg0, %c0_i32 : i32, i32
  }
}

</mosaic_0001>

<bundles_post_ra>
// kernel: tpu_custom_call.1
= control target key start
LH: loop header
LB: loop body
LE: loop exit
PB: predicated region body
PF: predicated region fallthrough
CT: control target
= control target key end

     0   :  { %6 = vsyncpa [#allocation3], 0  ;;  %s763_s0 = inlined_call_operand.hbm [shape: f32[128,512], index: 0, kind: input, shape index: {}]   ;;  %s764_s1 = inlined_call_operand.hbm [shape: f32[128,512], index: 1, kind: output, shape index: {}]  }
   0x1   :  { %8 = vsyncpa [#allocation3 + $0x1], 0 }
   0x2   :  { %9 = vsyncpa [#allocation4], 0 }
   0x3   :  { %11 = vsyncpa [#allocation4 + $0x1], 0  ;;  %s554_s6 = smov 0   ;;  %s556_s7 = smov 0  }
   0x4   :  { %s558_s8 = smov 0   ;;  %s560_s9 = smov 0  }
   0x5 LB: > { %s575_s10 = sadd.s32 4294967295, %s536_s9   ;;  %s338_s11 = sadd.s32 4294967294, %s536_s9   ;;  %s536_s9 = sphi %s560_s9, %s776_s9   ;;  %s532_s8 = sphi %s558_s8, %s775_s8   ;;  %s528_s7 = sphi %s556_s7, %s774_s7   ;;  %s524_s6 = sphi %s554_s6, %s773_s6  }
   0x6   : > { %s579_s12 = sadd.s32 1, %s536_s9   ;;  %s24_s13 = sadd.s32 1, %s532_s8 }
   0x7   : > { %s21_s14 = ssub.s32 %s536_s9, %s579_s12  ;;  %p31_p0 = scmp.ne.s32.totalorder %s532_s8, %s528_s7 }
   0x8   : > { %p22_p1 = scmp.eq.s32.totalorder %s21_s14, 0  ;;  %p32_p2 = scmp.eq.s32.totalorder %s536_s9, 0 }
   0x9   : > { %p37_p3 = scmp.ne.s32.totalorder %s528_s7, %s524_s6  ;;  %p38_p4 = scmp.eq.s32.totalorder %s575_s10, 0 }
   0xa   : > { %s591_s15 = scalar_select %p22_p1, %s532_s8, %s24_s13  }
   0xb   : > { %p593_p5 = por %p32_p2, %p31_p0  ;;  %p597_p6 = por %p38_p4, %p37_p3 }
   0xc   : > { %p61_p7 = scmp.eq.s32.totalorder %s575_s10, 3  ;;  %p67_p8 = scmp.eq.s32.totalorder %s338_s11, 3 }
   0xd   : > { %p370_p9 = scmp.lt.s32.totalorder %s536_s9, 4  ;;  %s87_s20 = sand.u32 1, %s532_s8  }
   0xe   : > { %p603_p10 = por %p61_p7, %p31_p0  ;;  %p607_p11 = por %p67_p8, %p37_p3 }
   0xf   : > { %s355_s21 = sshll.u32 %s536_s9, 11  ;;  %s341_s22 = sshll.u32 %s87_s20, 7 }
  0x10   : > { %s768_s18 = scalar_select %p603_p10, 1, 0 }
  0x11   : > { %s769_s19 = scalar_select %p607_p11, 1, 0 }
  0x12   : > { %s616_s25 = scalar_lea.hbm %s763_s0, %s355_s21  ;;  %s91_s26 = scalar_lea.vmem [#allocation2], %s341_s22 }
  0x13   : > { %s99_s27 = sshll.u32 %s91_s26, 4  ;;  %p620_p12 = pnand %p370_p9, %p593_p5  ;;  %s624_s27 = int_to_ptr.vmem [resolvable:$true] %s99_s27 }
  0x14   : > { %s626_s29 = scalar_lea.sflag [#allocation3], %s87_s20  ;;  %s440_s30 = scalar_lea.hbm %s616_s25, 2048 }
  0x15   : > { %p441_p13 = scmp.ne.s32.totalorder %s616_s25, %s440_s30  ;;  %p442_p0 = pneg %p620_p12 }
  0x16   : > { %s445_s4 = scalar_lea.hbm %s763_s0, 8192  ;;  %p446_p3 = scmp.lt.u32.totalorder %s616_s25, %s763_s0 }
  0x17   : > { %p443_p1 = pnand %p442_p0, %p441_p13  ;;  %p447_p4 = scmp.lt.u32.totalorder %s445_s4, %s440_s30 }
  0x18   : > { %p449_p7 = scmp.lt.u32.totalorder %s440_s30, %s616_s25 }
  0x19   : > { %p444_p2 = pneg %p443_p1  ;;  %p448_p5 = por %p447_p4, %p446_p3 }
  0x1b   : > { %p450_p8 = por %p449_p7, %p448_p5 }
  0x1d   : > { %p451_p9 = pnand %p450_p8, %p444_p2 }
  0x1f   : > { %454 = shalt.err (!%p451_p9)
}
  0x20   : > { %s455_s13 = scalar_lea.vmem %s624_s27, 2048  ;;  %s538_s14 = smov [#allocation2]  }
  0x21   : > { %p456_p13 = scmp.ne.s32.totalorder %s624_s27, %s455_s13  ;;  %s460_s16 = sshll.u32 %s538_s14, 4  ;;  %s461_s16 = int_to_ptr.vmem [resolvable:$false] %s460_s16 }
  0x22   : > { %s462_s20 = scalar_lea.vmem %s461_s16, 4096  ;;  %p463_p10 = scmp.lt.s32.totalorder %s624_s27, %s461_s16 }
  0x23   : > { %p458_p1 = pnand %p456_p13, %p442_p0  ;;  %p464_p3 = scmp.lt.s32.totalorder %s462_s20, %s455_s13 }
  0x25   : > { %p459_p11 = pneg %p458_p1  ;;  %p465_p4 = por %p464_p3, %p463_p10 }
  0x27   : > { %p466_p5 = pnand %p465_p4, %p459_p11 }
  0x29   : > { %469 = shalt.err (!%p466_p5)
}
  0x2a   : > { %s539_s21 = smov 512   ;;  %s540_s22 = smov 32  }
  0x2b   : > { %365 = dma.hbm_to_vmem [thread:$0]  (!%p620_p12), %s616_s25, 2048, %s624_s27, %s626_s29, %s539_s21, %s539_s21, %s540_s22  }
  0x2c   : > { %p345_p0 = scmp.ge.s32.totalorder %s536_s9, 1  ;;  %p107_p2 = scmp.lt.s32.totalorder %s536_s9, 5 }
  0x2e   : > { %p108_p7 = pnand %p345_p0, %p107_p2 }
  0x2f   : > { %s657_s23 = sand.u32 (!%p108_p7), 1, %s528_s7  }
  0x30   : > { %111 = sbr.rel (%p108_p7) target bundleno = 104 (0x68), region = 24  ;;  %s346_s24 = sshll.u32 (!%p108_p7), %s657_s23, 7 }
  0x31   : > { %s114_s26 = scalar_lea.sflag (!%p108_p7), [#allocation3], %s657_s23  ;;  %s663_s30 = scalar_lea.vmem (!%p108_p7), [#allocation2], %s346_s24 }
  0x37   : > { %515 = dma.done.wait (%p597_p6), %s114_s26, 2048  }
  0x38   : > { %517 = vsyncadd (%p597_p6), %s114_s26, 4294965248  ;;  %v138_v0 = vld [vmem:[%s663_s30] sm:$0xff]  ;;  %v139_v1 = vld [vmem:[%s663_s30 + $0x8] sm:$0xff]  ;;  %s693_s17 = scalar_lea.vmem [#allocation5], %s346_s24  ;;  %s357_s25 = sshll.u32 %s575_s10, 11 }
  0x39   : > { %v140_v2 = vld [vmem:[%s663_s30 + $0x10] sm:$0xff]  ;;  %v154_v3 = vmul.f32 %v138_v0, %v138_v0  ;;  %v155_v4 = vmul.f32 %v139_v1, %v139_v1  ;;  %v141_v6 = vld [vmem:[%s663_s30 + $0x18] sm:$0xff]  ;;  %v142_v7 = vld [vmem:[%s663_s30 + $0x20] sm:$0xff]  ;;  %s265_s27 = sshll.u32 %s693_s17, 4  ;;  %s715_s2 = scalar_lea.hbm %s764_s1, %s357_s25  ;;  %s717_s27 = int_to_ptr.vmem [resolvable:$true] %s265_s27 }
  0x3a   : > { %v156_v5 = vmul.f32 %v140_v2, %v140_v2  ;;  %v143_v8 = vld [vmem:[%s663_s30 + $0x28] sm:$0xff]  ;;  %v157_v9 = vmul.f32 %v141_v6, %v141_v6  ;;  %v158_v10 = vmul.f32 %v142_v7, %v142_v7  ;;  %v144_v14 = vld [vmem:[%s663_s30 + $0x30] sm:$0xff]  ;;  %v145_v15 = vld [vmem:[%s663_s30 + $0x38] sm:$0xff]  ;;  %s251_s10 = scalar_lea.sflag [#allocation4], %s657_s23  ;;  %s470_s3 = scalar_lea.vmem %s717_s27, 2048 }
  0x3b   : > { %v159_v11 = vmul.f32 %v143_v8, %v143_v8  ;;  %v186_v12 = vadd.f32 4.0, %v154_v3  ;;  %v187_v13 = vadd.f32 4.0, %v155_v4  ;;  %v146_v18 = vld [vmem:[%s663_s30 + $0x40] sm:$0xff]  ;;  %v147_v19 = vld [vmem:[%s663_s30 + $0x48] sm:$0xff]  ;;  %v148_v20 = vld [vmem:[%s663_s30 + $0x50] sm:$0xff]  ;;  %v160_v23 = vmul.f32 %v144_v14, %v144_v14  ;;  %p471_p6 = scmp.ne.s32.totalorder %s717_s27, %s470_s3  ;;  %p771_p10 = scmp.ne.s32.totalorder %s768_s18, 0 }
  0x3c   : > { %v188_v16 = vadd.f32 4.0, %v156_v5  ;;  %v189_v17 = vadd.f32 4.0, %v157_v9  ;;  %v190_v21 = vadd.f32 4.0, %v158_v10  ;;  %v161_v24 = vmul.f32 %v145_v15, %v145_v15  ;;  %v149_v29 = vld [vmem:[%s663_s30 + $0x58] sm:$0xff]  ;;  %v150_v30 = vld [vmem:[%s663_s30 + $0x60] sm:$0xff]  ;;  %v151_v33 = vld [vmem:[%s663_s30 + $0x68] sm:$0xff] }
  0x3d   : > { %408 = vrcp.f32 %v186_v12  ;;  %v191_v22 = vadd.f32 4.0, %v159_v11  ;;  %v162_v25 = vmul.f32 %v146_v18, %v146_v18  ;;  %v163_v26 = vmul.f32 %v147_v19, %v147_v19  ;;  %v152_v34 = vld [vmem:[%s663_s30 + $0x70] sm:$0xff]  ;;  %v153_v35 = vld [vmem:[%s663_s30 + $0x78] sm:$0xff]  ;;  %p472_p11 = pnand %p471_p6, %p771_p10  ;;  %s541_s4 = smov [#allocation5]  }
  0x3e   : > { %410 = vrcp.f32 %v187_v13  ;;  %v680_v27 = vmul.f32 %v148_v20, %v148_v20  ;;  %v192_v28 = vadd.f32 4.0, %v160_v23  ;;  %v193_v31 = vadd.f32 4.0, %v161_v24  ;;  %s474_s5 = sshll.u32 %s541_s4, 4  ;;  %s475_s5 = int_to_ptr.vmem [resolvable:$false] %s474_s5 }
  0x3f   : > { %412 = vrcp.f32 %v188_v16  ;;  %v194_v32 = vadd.f32 4.0, %v162_v25  ;;  %v170_v36 = vmul.f32 4.0, %v154_v3  ;;  %v195_v37 = vadd.f32 4.0, %v163_v26  ;;  %p473_p12 = pneg %p472_p11  ;;  %s476_s11 = scalar_lea.vmem %s475_s5, 4096 }
  0x40   : > { %414 = vrcp.f32 %v189_v17  ;;  %v196_v38 = vadd.f32 4.0, %v680_v27  ;;  %v165_v39 = vmul.f32 %v149_v29, %v149_v29  ;;  %v166_v40 = vmul.f32 %v150_v30, %v150_v30  ;;  %p477_p8 = scmp.lt.s32.totalorder %s717_s27, %s475_s5  ;;  %p478_p9 = scmp.lt.s32.totalorder %s476_s11, %s470_s3 }
  0x41   : > { %416 = vrcp.f32 %v190_v21  ;;  %v167_v41 = vmul.f32 %v151_v33, %v151_v33  ;;  %v168_v42 = vmul.f32 %v152_v34, %v152_v34  ;;  %v688_v43 = vmul.f32 %v153_v35, %v153_v35 }
  0x42   : > { %418 = vrcp.f32 %v191_v22  ;;  %v171_v44 = vmul.f32 4.0, %v155_v4  ;;  %v197_v45 = vadd.f32 4.0, %v165_v39  ;;  %v172_v46 = vmul.f32 4.0, %v156_v5  ;;  %p479_p13 = por %p478_p9, %p477_p8 }
  0x43   : > { %420 = vrcp.f32 %v192_v28  ;;  %v198_v47 = vadd.f32 4.0, %v166_v40  ;;  %v199_v48 = vadd.f32 4.0, %v167_v41  ;;  %v173_v50 = vmul.f32 4.0, %v157_v9 }
  0x44   : > { %422 = vrcp.f32 %v193_v31  ;;  %v200_v51 = vadd.f32 4.0, %v168_v42  ;;  %v174_v54 = vmul.f32 4.0, %v158_v10  ;;  %v201_v55 = vadd.f32 4.0, %v688_v43  ;;  %p480_p1 = pnand %p479_p13, %p473_p12 }
  0x45   : > { %424 = vrcp.f32 %v194_v32  ;;  %v175_v58 = vmul.f32 4.0, %v159_v11  ;;  %v176_v61 = vmul.f32 4.0, %v160_v23  ;;  %v177_v0 = vmul.f32 4.0, %v161_v24 }
  0x46   : > { %426 = vrcp.f32 %v195_v37  ;;  %v178_v3 = vmul.f32 4.0, %v162_v25  ;;  %v179_v6 = vmul.f32 4.0, %v163_v26  ;;  %v180_v9 = vmul.f32 4.0, %v680_v27 }
  0x47   : > { %v409_v49 = vpop.eup %408  ;;  %428 = vrcp.f32 %v196_v38  ;;  %v181_v12 = vmul.f32 4.0, %v165_v39  ;;  %v182_v15 = vmul.f32 4.0, %v166_v40  ;;  %v183_v18 = vmul.f32 4.0, %v167_v41 }
  0x48   : > { %v411_v52 = vpop.eup %410  ;;  %v218_v53 = vmul.f32 %v409_v49, %v170_v36  ;;  %430 = vrcp.f32 %v197_v45  ;;  %v184_v21 = vmul.f32 4.0, %v168_v42  ;;  %v185_v24 = vmul.f32 4.0, %v688_v43 }
  0x49   : > { %v413_v56 = vpop.eup %412  ;;  %v219_v57 = vmul.f32 %v411_v52, %v171_v44  ;;  %432 = vrcp.f32 %v198_v47 }
  0x4a   : > { %v415_v59 = vpop.eup %414  ;;  %234 = vst [vmem:[%s693_s17] sm:$0xff] %v218_v53  ;;  %v220_v60 = vmul.f32 %v413_v56, %v172_v46  ;;  %434 = vrcp.f32 %v199_v48 }
  0x4b   : > { %v417_v62 = vpop.eup %416  ;;  %235 = vst [vmem:[%s693_s17 + $0x8] sm:$0xff] %v219_v57  ;;  %v221_v63 = vmul.f32 %v415_v59, %v173_v50  ;;  %436 = vrcp.f32 %v200_v51 }
  0x4c   : > { %v419_v1 = vpop.eup %418  ;;  %236 = vst [vmem:[%s693_s17 + $0x10] sm:$0xff] %v220_v60  ;;  %v222_v2 = vmul.f32 %v417_v62, %v174_v54  ;;  %438 = vrcp.f32 %v201_v55 }
  0x4d   : > { %v421_v4 = vpop.eup %420  ;;  %237 = vst [vmem:[%s693_s17 + $0x18] sm:$0xff] %v221_v63  ;;  %v223_v5 = vmul.f32 %v419_v1, %v175_v58 }
  0x4e   : > { %v423_v7 = vpop.eup %422  ;;  %238 = vst [vmem:[%s693_s17 + $0x20] sm:$0xff] %v222_v2  ;;  %v224_v8 = vmul.f32 %v421_v4, %v176_v61 }
  0x4f   : > { %v425_v10 = vpop.eup %424  ;;  %239 = vst [vmem:[%s693_s17 + $0x28] sm:$0xff] %v223_v5  ;;  %v225_v11 = vmul.f32 %v423_v7, %v177_v0 }
  0x50   : > { %v427_v13 = vpop.eup %426  ;;  %240 = vst [vmem:[%s693_s17 + $0x30] sm:$0xff] %v224_v8  ;;  %v226_v14 = vmul.f32 %v425_v10, %v178_v3 }
  0x51   : > { %v429_v16 = vpop.eup %428  ;;  %241 = vst [vmem:[%s693_s17 + $0x38] sm:$0xff] %v225_v11  ;;  %v227_v17 = vmul.f32 %v427_v13, %v179_v6 }
  0x52   : > { %v431_v19 = vpop.eup %430  ;;  %242 = vst [vmem:[%s693_s17 + $0x40] sm:$0xff] %v226_v14  ;;  %v228_v20 = vmul.f32 %v429_v16, %v180_v9 }
  0x53   : > { %v433_v22 = vpop.eup %432  ;;  %243 = vst [vmem:[%s693_s17 + $0x48] sm:$0xff] %v227_v17  ;;  %v229_v23 = vmul.f32 %v431_v19, %v181_v12 }
  0x54   : > { %v435_v25 = vpop.eup %434  ;;  %244 = vst [vmem:[%s693_s17 + $0x50] sm:$0xff] %v228_v20  ;;  %v230_v26 = vmul.f32 %v433_v22, %v182_v15 }
  0x55   : > { %v437_v27 = vpop.eup %436  ;;  %245 = vst [vmem:[%s693_s17 + $0x58] sm:$0xff] %v229_v23  ;;  %v231_v28 = vmul.f32 %v435_v25, %v183_v18 }
  0x56   : > { %v439_v29 = vpop.eup %438  ;;  %246 = vst [vmem:[%s693_s17 + $0x60] sm:$0xff] %v230_v26  ;;  %v232_v30 = vmul.f32 %v437_v27, %v184_v21 }
  0x57   : > { %247 = vst [vmem:[%s693_s17 + $0x68] sm:$0xff] %v231_v28  ;;  %v233_v31 = vmul.f32 %v439_v29, %v185_v24 }
  0x58   : > { %248 = vst [vmem:[%s693_s17 + $0x70] sm:$0xff] %v232_v30 }
  0x59   : > { %249 = vst [vmem:[%s693_s17 + $0x78] sm:$0xff] %v233_v31 }
  0x5a   : > { %483 = shalt.err (!%p480_p1)
}
  0x5b   : > { %s484_s13 = scalar_lea.hbm %s715_s2, 2048  ;;  %s488_s20 = scalar_lea.hbm %s764_s1, 8192 }
  0x5c   : > { %p485_p3 = scmp.ne.s32.totalorder %s715_s2, %s484_s13  ;;  %p489_p0 = scmp.lt.u32.totalorder %s715_s2, %s764_s1 }
  0x5d   : > { %p490_p2 = scmp.lt.u32.totalorder %s488_s20, %s484_s13  ;;  %p492_p6 = scmp.lt.u32.totalorder %s484_s13, %s715_s2 }
  0x5e   : > { %p486_p4 = pnand %p485_p3, %p771_p10 }
  0x5f   : > { %p491_p7 = por %p490_p2, %p489_p0 }
  0x60   : > { %p487_p5 = pneg %p486_p4 }
  0x61   : > { %p493_p11 = por %p492_p6, %p491_p7 }
  0x63   : > { %p494_p12 = pnand %p493_p11, %p487_p5 }
  0x65   : > { %497 = shalt.err (!%p494_p12)
}
  0x66   : > { %s542_s24 = smov 512   ;;  %s543_s26 = smov 32  }
  0x67   : > { %360 = dma.vmem_to_hbm [thread:$0]  (%p771_p10), %s717_s27, 2048, %s715_s2, %s251_s10, %s542_s24, %s542_s24, %s543_s26  }
  0x68 PF: > { %p371_p8 = scmp.ge.s32.totalorder %s536_s9, 2  ;;  %s280_s30 = sand.u32 1, %s524_s6  }
  0x69   : > { %p772_p9 = scmp.ne.s32.totalorder %s769_s19, 0  ;;  %s281_s17 = scalar_lea.sflag [#allocation4], %s280_s30 }
  0x6b   : > { %p367_p13 = pnand %p371_p8, %p772_p9 }
  0x6d   : > { %519 = dma.done.wait (!%p367_p13), %s281_s17, 2048  }
  0x6e   : > { %521 = vsyncadd (!%p367_p13), %s281_s17, 4294965248  ;;  %p14_p1 = scmp.ge.s32.totalorder %s579_s12, 6   ;;  %s773_s6 = smov %s528_s7 }
  0x6f   : > { %s774_s7 = smov %s532_s8  ;;  %s775_s8 = smov %s591_s15 }
  0x70   : > { %s776_s9 = smov %s579_s12  ;;  %16 = sbr.rel (!%p14_p1) target bundleno = 5 (0x5), region = 69 }
  0x77   :  { %286 = vsyncpa [#allocation3], 1 }
  0x78   :  { %288 = vsyncpa [#allocation3 + $0x1], 1 }
  0x79   :  { %289 = vsyncpa [#allocation4], 1 }
  0x7a   :  { %291 = vsyncpa [#allocation4 + $0x1], 1 }

</bundles_post_ra>
